<compile_context>
chip_gen: v6e
topology: v6e:2x2x1
jax: 0.10.0
libtpu: 0.0.40
codegen_flags: <defaults>
</compile_context>

<pallas_src>
import functools
import math

import jax
import jax.numpy as jnp
from jax import lax
from jax.experimental import pallas as pl
from jax.experimental.pallas import tpu as pltpu


def _round_up(x, m):
    return ((x + m - 1) // m) * m


def _ntxent_block_kernel(reps_ref, pos_ref, out_ref, *, tm, n_valid, stab):
    """One (TM, N_pad) row block of the NT-Xent loss.

    reps_ref: (N_pad, D_pad) scaled representations, resident in VMEM (rhs; the
              lhs row block is sliced from it).
    pos_ref:  (TM, 1) positive logit per row (precomputed in the wrapper).
    out_ref:  (1, 8, 128) per-block partial sum of (logsumexp - positive).
    stab:     analytic stabilizer (1/T) for the cosine path, or None to use the
              in-kernel row max (raw dot-product path).
    """
    n_pad = reps_ref.shape[0]
    start = pl.multiple_of(pl.program_id(0) * tm, tm)

    reps = reps_ref[...]                       # (N_pad, D_pad), resident
    blk = reps_ref[pl.ds(start, tm), :]        # (TM, D_pad) aligned row-block view

    # logits[i, j] = <r_{start+i}, r_j>; 1/T (and cosine norms) already folded in.
    # A @ B^T form (contract minor dims of both) - the standard attention-style
    # MXU path, no explicit transpose of the big rhs.
    logits = lax.dot_general(
        blk, reps,
        dimension_numbers=(((1,), (1,)), ((), ())),
        preferred_element_type=jnp.float32,
    )  # (TM, N_pad) f32

    col = lax.broadcasted_iota(jnp.int32, (1, n_pad), 1)           # (1, N_pad)
    row = lax.broadcasted_iota(jnp.int32, (tm, 1), 0) + start      # (TM, 1) global row
    is_diag = col == row                                           # (TM, N_pad)

    if stab is not None:
        # Cosine path: every logit <= 1/T -> exp never overflows, no max pass.
        s = jnp.float32(stab)
        e = jnp.where(is_diag, jnp.float32(0.0), jnp.exp(logits - s))
        sum_exp = jnp.sum(e, axis=-1, keepdims=True)               # (TM, 1)
        # Padded columns are exactly-zero rows of reps -> logit exactly 0; remove
        # their exp(0 - s) contribution in closed form (no per-element pad mask).
        sum_exp = sum_exp - jnp.float32(n_pad - n_valid) * jnp.exp(-s)
        lse = s + jnp.log(sum_exp)
    else:
        # Raw dot-product path: unbounded logits -> keep the data-dependent max.
        kill = is_diag | (col >= n_valid)
        masked = jnp.where(kill, jnp.float32(-1e30), logits)
        m = jnp.max(masked, axis=-1, keepdims=True)                # (TM, 1)
        sum_exp = jnp.sum(jnp.exp(masked - m), axis=-1, keepdims=True)
        lse = m + jnp.log(sum_exp)

    contrib = jnp.where(row < n_valid, lse - pos_ref[...], jnp.float32(0.0))
    out_ref[...] = jnp.full((1, 8, 128), jnp.sum(contrib), dtype=jnp.float32)


def _vmem_estimate(tm, n_pad, d_pad, rhs_itemsize):
    # resident rhs (single-buffered) + (TM, N) f32 temps (logits / exp / mask,
    # with slack) + lhs row slice + misc (pos blocks, output, iotas).
    return (n_pad * d_pad * rhs_itemsize
            + 4 * tm * n_pad * 4
            + 2 * tm * d_pad * 4
            + (1 << 20))


def _pick_tiling(n, d_pad, block_rows, rhs_itemsize):
    """Generation-aware row-tile / VMEM-limit selection."""
    try:
        cap = int(pltpu.get_tpu_info().vmem_capacity_bytes)  # 128 MiB v5e/v6e, 64 MiB v7x
    except Exception:
        cap = 64 << 20                                       # conservative fallback
    budget = cap - (8 << 20)                                 # Mosaic internal-scratch headroom

    if n <= block_rows:
        tm = _round_up(n, 8)
    else:
        tm = _round_up(block_rows, 8)
        while tm > 8 and _vmem_estimate(tm, _round_up(n, tm), d_pad, rhs_itemsize) > budget:
            tm = max(8, tm // 2)
    n_pad = _round_up(n, tm)

    est = _vmem_estimate(tm, n_pad, d_pad, rhs_itemsize)
    vmem_limit = int(min(cap - (2 << 20), max(est + (8 << 20), 32 << 20)))
    return tm, n_pad, vmem_limit


def ntxent_loss(zis, zjs, *, temperature, use_cosine_similarity,
                block_rows=256, matmul_dtype=jnp.float32):
    """Equivalent of NTXentLoss(device, B, temperature, use_cosine).forward(zis, zjs)."""
    assert zis.shape == zjs.shape and zis.ndim == 2
    b, d = zis.shape
    n = 2 * b

    inv_sqrt_t = jnp.float32(1.0 / math.sqrt(float(temperature)))
    zis32 = zis.astype(jnp.float32)
    zjs32 = zjs.astype(jnp.float32)

    if use_cosine_similarity:
        # Fold CosineSimilarity's row normalization and 1/T into one per-row scale.
        # NOTE: PyTorch clamps ||x||*||y|| >= 1e-8; here each ||x|| is clamped to
        # >= 1e-4, which only differs for near-zero embeddings.
        def _scale(x):
            sumsq = jnp.sum(x * x, axis=-1, keepdims=True)
            return x * (lax.rsqrt(jnp.maximum(sumsq, jnp.float32(1e-8))) * inv_sqrt_t)
        stab = 1.0 / float(temperature)   # rows have norm 1/sqrt(T) -> logits <= 1/T
    else:
        def _scale(x):
            return x * inv_sqrt_t
        stab = None                       # unbounded logits -> in-kernel row max

    zis_s = _scale(zis32)
    zjs_s = _scale(zjs32)

    # representations = [zjs ; zis]; partner(i) = (i + B) mod N, so the positive
    # logit of row i is <zjs_s[i mod B], zis_s[i mod B]> -- an O(N*D) row-dot done
    # here instead of a partner array + per-step DMA in the kernel.
    reps = jnp.concatenate([zjs_s, zis_s], axis=0)                  # (N, D)
    pos_half = jnp.sum(zjs_s * zis_s, axis=-1, keepdims=True)       # (B, 1)
    pos = jnp.concatenate([pos_half, pos_half], axis=0)             # (N, 1)

    d_pad = _round_up(d, 128)
    rhs_itemsize = jnp.dtype(matmul_dtype).itemsize
    tm, n_pad, vmem_limit = _pick_tiling(n, d_pad, block_rows, rhs_itemsize)
    num_blocks = n_pad // tm

    reps_p = jnp.pad(reps, ((0, n_pad - n), (0, d_pad - d))).astype(matmul_dtype)
    pos_p = jnp.pad(pos, ((0, n_pad - n), (0, 0)))

    kernel = functools.partial(_ntxent_block_kernel, tm=tm, n_valid=n, stab=stab)

    def _call(single_buffer_rhs):
        if single_buffer_rhs:
            # Constant index_map -> the rhs is DMA'd once; a second pipeline
            # buffer would only waste VMEM.
            rhs_spec = pl.BlockSpec((n_pad, d_pad), lambda i: (0, 0),
                                    pipeline_mode=pl.Buffered(1))
        else:
            rhs_spec = pl.BlockSpec((n_pad, d_pad), lambda i: (0, 0))
        return pl.pallas_call(
            kernel,
            out_shape=jax.ShapeDtypeStruct((num_blocks, 8, 128), jnp.float32),
            grid=(num_blocks,),
            in_specs=[
                rhs_spec,                                    # resident reps (rhs + lhs source)
                pl.BlockSpec((tm, 1), lambda i: (i, 0)),     # positive logits per row
            ],
            out_specs=pl.BlockSpec((1, 8, 128), lambda i: (i, 0, 0)),
            compiler_params=pltpu.CompilerParams(
                dimension_semantics=("parallel",),
                vmem_limit_bytes=vmem_limit,
            ),
        )(reps_p, pos_p)

    try:
        partials = _call(True)
    except Exception:
        # Older jax without BlockSpec(pipeline_mode=pl.Buffered(1)) support.
        partials = _call(False)

    return jnp.sum(partials[:, 0, 0]) / jnp.float32(n)


def _reference_loss(zis, zjs, *, temperature, use_cosine_similarity):
    """Plain-JAX replica of the PyTorch forward (sanity check)."""
    b = zis.shape[0]
    n = 2 * b
    reps = jnp.concatenate([zjs, zis], axis=0).astype(jnp.float32)
    if use_cosine_similarity:
        nrm = jnp.sqrt(jnp.sum(reps * reps, axis=-1, keepdims=True))
        sim = (reps @ reps.T) / jnp.maximum(nrm * nrm.T, 1e-8)
    else:
        sim = reps @ reps.T
    l_pos = jnp.diagonal(sim, offset=b)
    r_pos = jnp.diagonal(sim, offset=-b)
    positives = jnp.concatenate([l_pos, r_pos]).reshape(n, 1)
    eye0 = jnp.eye(n, dtype=bool)
    eye_p = jnp.eye(n, k=b, dtype=bool)
    eye_m = jnp.eye(n, k=-b, dtype=bool)
    neg_mask = ~(eye0 | eye_p | eye_m)
    negatives = sim[neg_mask].reshape(n, -1)
    logits = jnp.concatenate([positives, negatives], axis=1) / temperature
    lse = jax.scipy.special.logsumexp(logits, axis=-1)
    loss = jnp.sum(lse - logits[:, 0])
    return loss / n


if __name__ == "__main__":
    TEMPERATURE = 0.5
    key = jax.random.PRNGKey(0)

    def _check(b, d, use_cosine, block_rows, matmul_dtype, tol):
        k1, k2 = jax.random.split(jax.random.fold_in(key, b * 1000 + d), 2)
        zis = jax.random.normal(k1, (b, d), dtype=jnp.float32)
        zjs = jax.random.normal(k2, (b, d), dtype=jnp.float32)
        loss = ntxent_loss(zis, zjs, temperature=TEMPERATURE,
                           use_cosine_similarity=use_cosine,
                           block_rows=block_rows, matmul_dtype=matmul_dtype)
        loss = jax.block_until_ready(loss)
        ref = _reference_loss(zis, zjs, temperature=TEMPERATURE,
                              use_cosine_similarity=use_cosine)
        assert jnp.isfinite(loss), (b, d, use_cosine, float(loss))
        assert jnp.allclose(loss, ref, atol=tol, rtol=tol), \
            (b, d, use_cosine, str(matmul_dtype), float(loss), float(ref))

    # Small single-block shapes (cosine + raw dot similarity).
    for use_cosine in (True, False):
        _check(4, 32, use_cosine, 256, jnp.float32, 1e-3)
    # Multi-block grid with row and column padding.
    for use_cosine in (True, False):
        _check(72, 24, use_cosine, 64, jnp.float32, 1e-3)
    # Optional bf16 MXU operands (logsumexp / positives stay f32).
    _check(4, 32, True, 256, jnp.bfloat16, 5e-2)

    print("KERNEL_OK")
</pallas_src>

<mosaic_0001>
module attributes {stable_mosaic.version = 11 : i64} {
  func.func @_ntxent_block_kernel(%arg0: i32, %arg1: memref<8x128xf32, #tpu.memory_space<vmem>>, %arg2: memref<8x1xf32, #tpu.memory_space<vmem>>, %arg3: memref<1x8x128xf32, #tpu.memory_space<vmem>>) attributes {dimension_semantics = [#tpu.dimension_semantics<parallel>], iteration_bounds = array<i64: 1>, scalar_prefetch = 0 : i64, scratch_operands = 0 : i64, tpu.core_type = #tpu.core_type<tc>, window_params = [{pipeline_mode = #tpu.pipeline_mode<synchronous>, transform_indices = @transform_0, window_bounds = array<i64: 8, 128>}, {transform_indices = @transform_1, window_bounds = array<i64: 8, 1>}, {transform_indices = @transform_2, window_bounds = array<i64: 1, 8, 128>}]} {
    %c8_i32 = arith.constant 8 : i32
    %0 = arith.muli %arg0, %c8_i32 : i32
    %1 = tpu.assume_multiple %0, 8 : i32
    %c0 = arith.constant 0 : index
    %c0_0 = arith.constant 0 : index
    %2 = vector.load %arg1[%c0, %c0_0] : memref<8x128xf32, #tpu.memory_space<vmem>>, vector<8x128xf32>
    %3 = arith.index_cast %1 : i32 to index
    %c0_1 = arith.constant 0 : index
    %4 = vector.load %arg1[%3, %c0_1] : memref<8x128xf32, #tpu.memory_space<vmem>>, vector<8x128xf32>
    %cst = arith.constant dense<0.000000e+00> : vector<8x8xf32>
    %5 = tpu.matmul %4, %2, %cst {dimension_numbers = #tpu.dot_dimension_numbers<[1], [1], [0], [0], [0, 0, 1, 0], [], []>} : vector<8x128xf32>, vector<8x128xf32>, vector<8x8xf32> -> vector<8x8xf32>
    %6 = tpu.iota {dimensions = array<i32: 1>} : vector<1x8xi32>
    %7 = tpu.iota {dimensions = array<i32: 0>} : vector<8x1xi32>
    %8 = vector.broadcast %1 : i32 to vector<8x1xi32>
    %9 = arith.addi %7, %8 : vector<8x1xi32>
    %10 = vector.broadcast %6 : vector<1x8xi32> to vector<8x8xi32>
    %11 = vector.broadcast %9 : vector<8x1xi32> to vector<8x8xi32>
    %12 = arith.cmpi eq, %10, %11 : vector<8x8xi32>
    %cst_2 = arith.constant 2.000000e+00 : f32
    %13 = vector.broadcast %cst_2 : f32 to vector<8x8xf32>
    %14 = arith.subf %5, %13 : vector<8x8xf32>
    %15 = math.exp %14 : vector<8x8xf32>
    %cst_3 = arith.constant 0.000000e+00 : f32
    %16 = vector.broadcast %cst_3 : f32 to vector<8x8xf32>
    %17 = arith.select %12, %16, %15 : vector<8x8xi1>, vector<8x8xf32>
    %cst_4 = arith.constant dense<0.000000e+00> : vector<8xf32>
    %18 = vector.multi_reduction <add>, %17, %cst_4 [1] : vector<8x8xf32> to vector<8xf32>
    %19 = vector.shape_cast %18 : vector<8xf32> to vector<8x1xf32>
    %cst_5 = arith.constant 0.000000e+00 : f32
    %cst_6 = arith.constant 2.000000e+00 : f32
    %20 = arith.subf %cst_5, %cst_6 : f32
    %21 = math.exp %20 : f32
    %cst_7 = arith.constant 0.000000e+00 : f32
    %22 = arith.mulf %cst_7, %21 : f32
    %23 = vector.broadcast %22 : f32 to vector<8x1xf32>
    %24 = arith.subf %19, %23 : vector<8x1xf32>
    %25 = math.log %24 : vector<8x1xf32>
    %cst_8 = arith.constant 2.000000e+00 : f32
    %26 = vector.broadcast %cst_8 : f32 to vector<8x1xf32>
    %27 = arith.addf %26, %25 : vector<8x1xf32>
    %c8_i32_9 = arith.constant 8 : i32
    %28 = vector.broadcast %c8_i32_9 : i32 to vector<8x1xi32>
    %29 = arith.cmpi slt, %9, %28 : vector<8x1xi32>
    %c0_10 = arith.constant 0 : index
    %c0_11 = arith.constant 0 : index
    %30 = vector.load %arg2[%c0_10, %c0_11] : memref<8x1xf32, #tpu.memory_space<vmem>>, vector<8x1xf32>
    %31 = arith.subf %27, %30 : vector<8x1xf32>
    %cst_12 = arith.constant 0.000000e+00 : f32
    %32 = vector.broadcast %cst_12 : f32 to vector<8x1xf32>
    %33 = arith.select %29, %31, %32 : vector<8x1xi1>, vector<8x1xf32>
    %34 = vector.shape_cast %33 : vector<8x1xf32> to vector<1x8x1xf32>
    %cst_13 = arith.constant dense<0.000000e+00> : vector<1xf32>
    %35 = vector.multi_reduction <add>, %34, %cst_13 [1, 2] : vector<1x8x1xf32> to vector<1xf32>
    %36 = vector.shape_cast %35 : vector<1xf32> to vector<1x1x1xf32>
    %37 = vector.extract %36[0, 0, 0] : f32 from vector<1x1x1xf32>
    %38 = vector.broadcast %37 : f32 to vector<1x8x128xf32>
    %c0_14 = arith.constant 0 : index
    %c0_15 = arith.constant 0 : index
    %c0_16 = arith.constant 0 : index
    %39 = vector.load %arg3[%c0_14, %c0_15, %c0_16] : memref<1x8x128xf32, #tpu.memory_space<vmem>>, vector<1x8x128xf32>
    tpu.vector_store %arg3[%c0_14, %c0_15, %c0_16], %38 {strides = array<i32>} : memref<1x8x128xf32, #tpu.memory_space<vmem>>, vector<1x8x128xf32>,
    return
  }
  func.func @transform_0(%arg0: i32) -> (i32, i32) {
    %c0_i32 = arith.constant 0 : i32
    %c0_i32_0 = arith.constant 0 : i32
    %c0_i32_1 = arith.constant 0 : i32
    return %c0_i32, %c0_i32_0 : i32, i32
  }
  func.func @transform_1(%arg0: i32) -> (i32, i32) {
    %c0_i32 = arith.constant 0 : i32
    %c0_i32_0 = arith.constant 0 : i32
    return %arg0, %c0_i32 : i32, i32
  }
  func.func @transform_2(%arg0: i32) -> (i32, i32, i32) {
    %c0_i32 = arith.constant 0 : i32
    %c0_i32_0 = arith.constant 0 : i32
    %c0_i32_1 = arith.constant 0 : i32
    return %arg0, %c0_i32, %c0_i32_0 : i32, i32, i32
  }
}

module attributes {stable_mosaic.version = 11 : i64} {
  func.func @_ntxent_block_kernel(%arg0: i32, %arg1: memref<8x128xf32, #tpu.memory_space<vmem>>, %arg2: memref<8x1xf32, #tpu.memory_space<vmem>>, %arg3: memref<1x8x128xf32, #tpu.memory_space<vmem>>) attributes {dimension_semantics = [#tpu.dimension_semantics<parallel>], iteration_bounds = array<i64: 1>, scalar_prefetch = 0 : i64, scratch_operands = 0 : i64, tpu.core_type = #tpu.core_type<tc>, window_params = [{pipeline_mode = #tpu.pipeline_mode<synchronous>, transform_indices = @transform_0, window_bounds = array<i64: 8, 128>}, {transform_indices = @transform_1, window_bounds = array<i64: 8, 1>}, {transform_indices = @transform_2, window_bounds = array<i64: 1, 8, 128>}]} {
    %c8_i32 = arith.constant 8 : i32
    %0 = arith.muli %arg0, %c8_i32 : i32
    %1 = tpu.assume_multiple %0, 8 : i32
    %c0 = arith.constant 0 : index
    %c0_0 = arith.constant 0 : index
    %2 = vector.load %arg1[%c0, %c0_0] : memref<8x128xf32, #tpu.memory_space<vmem>>, vector<8x128xf32>
    %3 = arith.index_cast %1 : i32 to index
    %c0_1 = arith.constant 0 : index
    %4 = vector.load %arg1[%3, %c0_1] : memref<8x128xf32, #tpu.memory_space<vmem>>, vector<8x128xf32>
    %cst = arith.constant dense<0.000000e+00> : vector<8x8xf32>
    %5 = tpu.matmul %4, %2, %cst {dimension_numbers = #tpu.dot_dimension_numbers<[1], [1], [0], [0], [0, 0, 1, 0], [], []>} : vector<8x128xf32>, vector<8x128xf32>, vector<8x8xf32> -> vector<8x8xf32>
    %6 = tpu.iota {dimensions = array<i32: 1>} : vector<1x8xi32>
    %7 = tpu.iota {dimensions = array<i32: 0>} : vector<8x1xi32>
    %8 = vector.broadcast %1 : i32 to vector<8x1xi32>
    %9 = arith.addi %7, %8 : vector<8x1xi32>
    %10 = vector.broadcast %6 : vector<1x8xi32> to vector<8x8xi32>
    %11 = vector.broadcast %9 : vector<8x1xi32> to vector<8x8xi32>
    %12 = arith.cmpi eq, %10, %11 : vector<8x8xi32>
    %cst_2 = arith.constant 2.000000e+00 : f32
    %13 = vector.broadcast %cst_2 : f32 to vector<8x8xf32>
    %14 = arith.subf %5, %13 : vector<8x8xf32>
    %15 = math.exp %14 : vector<8x8xf32>
    %cst_3 = arith.constant 0.000000e+00 : f32
    %16 = vector.broadcast %cst_3 : f32 to vector<8x8xf32>
    %17 = arith.select %12, %16, %15 : vector<8x8xi1>, vector<8x8xf32>
    %cst_4 = arith.constant dense<0.000000e+00> : vector<8xf32>
    %18 = vector.multi_reduction <add>, %17, %cst_4 [1] : vector<8x8xf32> to vector<8xf32>
    %19 = vector.shape_cast %18 : vector<8xf32> to vector<8x1xf32>
    %cst_5 = arith.constant 0.000000e+00 : f32
    %cst_6 = arith.constant 2.000000e+00 : f32
    %20 = arith.subf %cst_5, %cst_6 : f32
    %21 = math.exp %20 : f32
    %cst_7 = arith.constant 0.000000e+00 : f32
    %22 = arith.mulf %cst_7, %21 : f32
    %23 = vector.broadcast %22 : f32 to vector<8x1xf32>
    %24 = arith.subf %19, %23 : vector<8x1xf32>
    %25 = math.log %24 : vector<8x1xf32>
    %cst_8 = arith.constant 2.000000e+00 : f32
    %26 = vector.broadcast %cst_8 : f32 to vector<8x1xf32>
    %27 = arith.addf %26, %25 : vector<8x1xf32>
    %c8_i32_9 = arith.constant 8 : i32
    %28 = vector.broadcast %c8_i32_9 : i32 to vector<8x1xi32>
    %29 = arith.cmpi slt, %9, %28 : vector<8x1xi32>
    %c0_10 = arith.constant 0 : index
    %c0_11 = arith.constant 0 : index
    %30 = vector.load %arg2[%c0_10, %c0_11] : memref<8x1xf32, #tpu.memory_space<vmem>>, vector<8x1xf32>
    %31 = arith.subf %27, %30 : vector<8x1xf32>
    %cst_12 = arith.constant 0.000000e+00 : f32
    %32 = vector.broadcast %cst_12 : f32 to vector<8x1xf32>
    %33 = arith.select %29, %31, %32 : vector<8x1xi1>, vector<8x1xf32>
    %34 = vector.shape_cast %33 : vector<8x1xf32> to vector<1x8x1xf32>
    %cst_13 = arith.constant dense<0.000000e+00> : vector<1xf32>
    %35 = vector.multi_reduction <add>, %34, %cst_13 [1, 2] : vector<1x8x1xf32> to vector<1xf32>
    %36 = vector.shape_cast %35 : vector<1xf32> to vector<1x1x1xf32>
    %37 = vector.extract %36[0, 0, 0] : f32 from vector<1x1x1xf32>
    %38 = vector.broadcast %37 : f32 to vector<1x8x128xf32>
    %c0_14 = arith.constant 0 : index
    %c0_15 = arith.constant 0 : index
    %c0_16 = arith.constant 0 : index
    %39 = vector.load %arg3[%c0_14, %c0_15, %c0_16] : memref<1x8x128xf32, #tpu.memory_space<vmem>>, vector<1x8x128xf32>
    tpu.vector_store %arg3[%c0_14, %c0_15, %c0_16], %38 {strides = array<i32>} : memref<1x8x128xf32, #tpu.memory_space<vmem>>, vector<1x8x128xf32>,
    return
  }
  func.func @transform_0(%arg0: i32) -> (i32, i32) {
    %c0_i32 = arith.constant 0 : i32
    %c0_i32_0 = arith.constant 0 : i32
    %c0_i32_1 = arith.constant 0 : i32
    return %c0_i32, %c0_i32_0 : i32, i32
  }
  func.func @transform_1(%arg0: i32) -> (i32, i32) {
    %c0_i32 = arith.constant 0 : i32
    %c0_i32_0 = arith.constant 0 : i32
    return %arg0, %c0_i32 : i32, i32
  }
  func.func @transform_2(%arg0: i32) -> (i32, i32, i32) {
    %c0_i32 = arith.constant 0 : i32
    %c0_i32_0 = arith.constant 0 : i32
    %c0_i32_1 = arith.constant 0 : i32
    return %arg0, %c0_i32, %c0_i32_0 : i32, i32, i32
  }
}

</mosaic_0001>

<bundles_post_ra>
// kernel: tpu_custom_call.1
= control target key start
LH: loop header
LB: loop body
LE: loop exit
PB: predicated region body
PF: predicated region fallthrough
CT: control target
= control target key end

     0   :  { %s201_s0 = inlined_call_operand.vmem [shape: f32[8,128], index: 0, kind: input, shape index: {}]   ;;  %s202_s1 = inlined_call_operand.vmem [shape: f32[8,1], index: 1, kind: input, shape index: {}]   ;;  %s203_s2 = inlined_call_operand.hbm [shape: f32[1,8,128], index: 2, kind: output, shape index: {}]  }
   0x1   :  { %v13_v0 = vld [vmem:[%s201_s0] sm:$0xff] }
   0x2   :  { %7 = vsyncpa [#allocation3], 0  ;;  %v174_v1 = vmov 0.0   ;;  %vm175_vm0 = vmmov 0   ;;  %v86_v6 = vlaneseq  ;;  %vm97_vm2 = vcmask 64512   ;;  %v105_v15 = vld [vmem:[%s202_s1] sm:$0xff] }
   0x3   :  { %138 = vmatprep.subr.mxu0 %v174_v1  ;;  %140 = vmatprep.mubr.msk.f32.mxu0 %vm175_vm0, %v174_v1  ;;  %vm108_vm3 = vcmask 7168   ;;  %s176_s12 = smov [#allocation2]  }
   0x4   :  { %139 = vmatpush3.xpose.msra.mxu0 %v13_v0  ;;  %v87_v7 = vand.u32 127, %v86_v6  ;;  %v89_v8 = vshrl.u32 %v86_v6, 7  ;;  %s127_s13 = sshll.u32 %s176_s12, 4  ;;  %s128_s13 = int_to_ptr.vmem [resolvable:$true] %s127_s13 }
   0x5   :  { %s152_s1 = scalar_lea.vmem %s128_s13, 128  ;;  %p157_p1 = scmp.lt.s32.totalorder %s128_s13, %s128_s13 }
   0x6   :  { %vm92_vm1 = vcmp.eq.s32.totalorder %v87_v7, %v89_v8  ;;  %p153_p0 = scmp.ne.s32.totalorder %s128_s13, %s152_s1  ;;  %p158_p2 = scmp.lt.s32.totalorder %s152_s1, %s152_s1 }
   0x7   :  { %141 = vmatmul.mubr.f32.vlgmr.msra.gmra.mxu0 %v13_v0 }
   0x8   :  { %p159_p3 = por %p158_p2, %p157_p1 }
   0xa   :  { %p160_p4 = pnand %p159_p3, %p153_p0 }
  0xc7   :  { %v82_v2 = vpop.f32.mrf.mxu0 }
  0xc8   :  { %v135_v3 = vadd.f32 -2.0, %v82_v2 }
  0xc9   :  { %v142_v4 = vpop.f32.mrf.mxu0 }
  0xca   :  { %v94_v5 = vmul.f32 1.442695, %v135_v3 }
  0xcc   :  { %148 = vpow2.f32 %v94_v5 }
  0xd9   :  { %v149_v9 = vpop.eup %148 }
  0xda   :  { %v96_v10 = vsel %vm92_vm1, 0.0, %v149_v9 }
  0xdb   :  { %v98_v11 = vsel %vm97_vm2, %v96_v10, 0.0 }
  0xdc   :  { %99 = vadd.xlane.f32.xlu0 %v98_v11 }
 0x165   :  { %v100_v12 = vpop.xlane.xlu0 %99 }
 0x166   :  { %150 = vlog2.f32 %v100_v12 }
 0x173   :  { %v151_v13 = vpop.eup %150 }
 0x174   :  { %v102_v14 = vmul.f32 0.6931472, %v151_v13 }
 0x176   :  { %v103_v16 = vadd.f32 2.0, %v102_v14 }
 0x178   :  { %v106_v17 = vsub.f32 %v103_v16, %v105_v15 }
 0x17a   :  { %v109_v18 = vsel %vm108_vm3, %v106_v17, 0.0 }
 0x17b   :  { %110 = vadd.xlane.f32.xlu0 %v109_v18 }
 0x204   :  { %v111_v19 = vpop.xlane.xlu0 %110 }
 0x205   :  { %v112_v20 = vrot.slane %v111_v19, 4 }
 0x207   :  { %v113_v21 = vadd.f32 %v112_v20, %v111_v19 }
 0x209   :  { %v114_v22 = vrot.slane %v113_v21, 2 }
 0x20b   :  { %v115_v23 = vadd.f32 %v114_v22, %v113_v21 }
 0x20d   :  { %v116_v24 = vrot.slane %v115_v23, 1 }
 0x20f   :  { %v117_v25 = vadd.f32 %v116_v24, %v115_v23 }
 0x211   :  { %143 = vpush %v117_v25 }
 0x242   :  { %s144_s14 = spop %143 }
 0x243   :  { %v119_v26 = vstv %s144_s14 }
 0x244   :  { %120 = vst [vmem:[#allocation2] sm:$0xff] %v119_v26 }
 0x245   :  { %163 = shalt.err (!%p160_p4)
}
 0x246   :  { %130 = dma.vmem_to_hbm [thread:$0]  %s128_s13, 128, %s203_s2, [#allocation3]  }
 0x247   :  { %172 = dma.done.wait [#allocation3], 128  }
 0x248   :  { %173 = vsyncadd [#allocation3], 4294967168 }
 0x249   :  { %134 = vsyncpa [#allocation3], 1 }

// kernel: tpu_custom_call.1
= control target key start
LH: loop header
LB: loop body
LE: loop exit
PB: predicated region body
PF: predicated region fallthrough
CT: control target
= control target key end

     0   :  { %s201_s0 = inlined_call_operand.vmem [shape: f32[8,128], index: 0, kind: input, shape index: {}]   ;;  %s202_s1 = inlined_call_operand.vmem [shape: f32[8,1], index: 1, kind: input, shape index: {}]   ;;  %s203_s2 = inlined_call_operand.hbm [shape: f32[1,8,128], index: 2, kind: output, shape index: {}]  }
   0x1   :  { %v13_v0 = vld [vmem:[%s201_s0] sm:$0xff] }
   0x2   :  { %7 = vsyncpa [#allocation3], 0  ;;  %v174_v1 = vmov 0.0   ;;  %vm175_vm0 = vmmov 0   ;;  %v86_v6 = vlaneseq  ;;  %vm97_vm2 = vcmask 64512   ;;  %v105_v15 = vld [vmem:[%s202_s1] sm:$0xff] }
   0x3   :  { %138 = vmatprep.subr.mxu0 %v174_v1  ;;  %140 = vmatprep.mubr.msk.f32.mxu0 %vm175_vm0, %v174_v1  ;;  %vm108_vm3 = vcmask 7168   ;;  %s176_s12 = smov [#allocation2]  }
   0x4   :  { %139 = vmatpush3.xpose.msra.mxu0 %v13_v0  ;;  %v87_v7 = vand.u32 127, %v86_v6  ;;  %v89_v8 = vshrl.u32 %v86_v6, 7  ;;  %s127_s13 = sshll.u32 %s176_s12, 4  ;;  %s128_s13 = int_to_ptr.vmem [resolvable:$true] %s127_s13 }
   0x5   :  { %s152_s1 = scalar_lea.vmem %s128_s13, 128  ;;  %p157_p1 = scmp.lt.s32.totalorder %s128_s13, %s128_s13 }
   0x6   :  { %vm92_vm1 = vcmp.eq.s32.totalorder %v87_v7, %v89_v8  ;;  %p153_p0 = scmp.ne.s32.totalorder %s128_s13, %s152_s1  ;;  %p158_p2 = scmp.lt.s32.totalorder %s152_s1, %s152_s1 }
   0x7   :  { %141 = vmatmul.mubr.f32.vlgmr.msra.gmra.mxu0 %v13_v0 }
   0x8   :  { %p159_p3 = por %p158_p2, %p157_p1 }
   0xa   :  { %p160_p4 = pnand %p159_p3, %p153_p0 }
  0xc7   :  { %v82_v2 = vpop.f32.mrf.mxu0 }
  0xc8   :  { %v135_v3 = vadd.f32 -2.0, %v82_v2 }
  0xc9   :  { %v142_v4 = vpop.f32.mrf.mxu0 }
  0xca   :  { %v94_v5 = vmul.f32 1.442695, %v135_v3 }
  0xcc   :  { %148 = vpow2.f32 %v94_v5 }
  0xd9   :  { %v149_v9 = vpop.eup %148 }
  0xda   :  { %v96_v10 = vsel %vm92_vm1, 0.0, %v149_v9 }
  0xdb   :  { %v98_v11 = vsel %vm97_vm2, %v96_v10, 0.0 }
  0xdc   :  { %99 = vadd.xlane.f32.xlu0 %v98_v11 }
 0x165   :  { %v100_v12 = vpop.xlane.xlu0 %99 }
 0x166   :  { %150 = vlog2.f32 %v100_v12 }
 0x173   :  { %v151_v13 = vpop.eup %150 }
 0x174   :  { %v102_v14 = vmul.f32 0.6931472, %v151_v13 }
 0x176   :  { %v103_v16 = vadd.f32 2.0, %v102_v14 }
 0x178   :  { %v106_v17 = vsub.f32 %v103_v16, %v105_v15 }
 0x17a   :  { %v109_v18 = vsel %vm108_vm3, %v106_v17, 0.0 }
 0x17b   :  { %110 = vadd.xlane.f32.xlu0 %v109_v18 }
 0x204   :  { %v111_v19 = vpop.xlane.xlu0 %110 }
 0x205   :  { %v112_v20 = vrot.slane %v111_v19, 4 }
 0x207   :  { %v113_v21 = vadd.f32 %v112_v20, %v111_v19 }
 0x209   :  { %v114_v22 = vrot.slane %v113_v21, 2 }
 0x20b   :  { %v115_v23 = vadd.f32 %v114_v22, %v113_v21 }
 0x20d   :  { %v116_v24 = vrot.slane %v115_v23, 1 }
 0x20f   :  { %v117_v25 = vadd.f32 %v116_v24, %v115_v23 }
 0x211   :  { %143 = vpush %v117_v25 }
 0x242   :  { %s144_s14 = spop %143 }
 0x243   :  { %v119_v26 = vstv %s144_s14 }
 0x244   :  { %120 = vst [vmem:[#allocation2] sm:$0xff] %v119_v26 }
 0x245   :  { %163 = shalt.err (!%p160_p4)
}
 0x246   :  { %130 = dma.vmem_to_hbm [thread:$0]  %s128_s13, 128, %s203_s2, [#allocation3]  }
 0x247   :  { %172 = dma.done.wait [#allocation3], 128  }
 0x248   :  { %173 = vsyncadd [#allocation3], 4294967168 }
 0x249   :  { %134 = vsyncpa [#allocation3], 1 }

</bundles_post_ra>
